<compile_context>
chip_gen: v5e
topology: v5e:2x2
jax: 0.10.0
libtpu: 0.0.40
codegen_flags: <defaults>
</compile_context>

<pallas_src>
import functools

import jax
import jax.numpy as jnp
from jax.experimental import pallas as pl
from jax.experimental.pallas import tpu as pltpu


# ---------------------------------------------------------------------------
# Fused Pallas kernel: all GCNConv+ELU layers, global_add_pool, final Linear
# ---------------------------------------------------------------------------
def _fused_gnn_kernel(a_ref, x_ref, w_ref, b_ref, p_ref, lw_ref, lb_ref,
                      out_ref, acts_ref):
    """out = (P @ h_L) @ W_lin + b_lin ;  acts = h_L
       h_{l+1} = ELU( A_hat @ (h_l @ W_l) + b_l ),  h_0 = x.
       All matmul operands bf16, accumulation + epilogue f32."""
    h = x_ref[...]                                   # bf16 [NP, CP]
    a = a_ref[...]                                   # bf16 [NP, NP]
    num_layers = w_ref.shape[0]                      # static
    hf = None
    for l in range(num_layers):                      # static unrolled loop
        xw = jnp.dot(h, w_ref[l], preferred_element_type=jnp.float32)
        z = jnp.dot(a, xw.astype(jnp.bfloat16),
                    preferred_element_type=jnp.float32) + b_ref[l]   # f32 bias add
        # ELU in f32; exp only on the non-positive branch (no spurious inf).
        hf = jnp.where(z > 0.0, z, jnp.exp(jnp.minimum(z, 0.0)) - 1.0)
        h = hf.astype(jnp.bfloat16)
    acts_ref[...] = hf                               # final_conv_acts (f32)
    pooled = jnp.dot(p_ref[...], h, preferred_element_type=jnp.float32)
    out_ref[...] = (
        jnp.dot(pooled.astype(jnp.bfloat16), lw_ref[...],
                preferred_element_type=jnp.float32) + lb_ref[...]
    )


def _full_spec(shape):
    # Single-block spec: block == full (padded, lane-dense) array, grid=(1,)
    return pl.BlockSpec(shape, lambda i: tuple(0 for _ in shape))


@jax.jit
def fused_gnn_forward(a_hat_p, x_p, w_stack, b_stack, pool_p, lw_p, lb_p):
    np_, cp = x_p.shape
    gp = pool_p.shape[0]
    outp = lw_p.shape[1]
    return pl.pallas_call(
        _fused_gnn_kernel,
        out_shape=(
            jax.ShapeDtypeStruct((gp, outp), jnp.float32),   # graph-level out
            jax.ShapeDtypeStruct((np_, cp), jnp.float32),    # final_conv_acts
        ),
        grid=(1,),
        in_specs=[
            _full_spec(a_hat_p.shape),
            _full_spec(x_p.shape),
            _full_spec(w_stack.shape),
            _full_spec(b_stack.shape),
            _full_spec(pool_p.shape),
            _full_spec(lw_p.shape),
            _full_spec(lb_p.shape),
        ],
        out_specs=(
            _full_spec((gp, outp)),
            _full_spec((np_, cp)),
        ),
        compiler_params=pltpu.CompilerParams(
            dimension_semantics=("arbitrary",),
        ),
    )(a_hat_p, x_p, w_stack, b_stack, pool_p, lw_p, lb_p)


# ---------------------------------------------------------------------------
# Glue (plain JAX): padding, normalized adjacency, pooling matrix, param init
# ---------------------------------------------------------------------------
def _round_up(v, m):
    return ((v + m - 1) // m) * m


def _pad_to(x, shape):
    pads = [(0, s - d) for d, s in zip(x.shape, shape)]
    return jnp.pad(x, pads)


def build_norm_adj(edge_index, num_nodes):
    """Dense D^{-1/2}(A + I)D^{-1/2} matching PyG gcn_norm (add_remaining_self_loops)."""
    src, dst = edge_index[0], edge_index[1]
    # A[i, j] = multiplicity of edge j -> i (aggregation over sources)
    adj = jnp.zeros((num_nodes, num_nodes), jnp.float32).at[dst, src].add(1.0)
    # add_remaining_self_loops: only add a self-loop where one does not already exist.
    diag = jnp.diagonal(adj)
    adj = adj + jnp.diag(jnp.where(diag > 0.0, 0.0, 1.0))
    deg = adj.sum(axis=1)
    dinv = jnp.where(deg > 0.0, 1.0 / jnp.sqrt(deg), 0.0)
    return dinv[:, None] * adj * dinv[None, :]


def build_pool_matrix(batch, num_graphs):
    """P[g, i] = 1.0 iff node i belongs to graph g (global_add_pool)."""
    return (batch[None, :] == jnp.arange(num_graphs)[:, None]).astype(jnp.float32)


def init_linear(key, fan_in, fan_out):
    """Deterministic torch-style init: U(-1/sqrt(fan_in), 1/sqrt(fan_in))."""
    kw, kb = jax.random.split(key)
    bound = 1.0 / jnp.sqrt(jnp.float32(fan_in))
    w = jax.random.uniform(kw, (fan_in, fan_out), jnp.float32, -bound, bound)
    b = jax.random.uniform(kb, (1, fan_out), jnp.float32, -bound, bound)
    return w, b


def pack_params(conv_params, lin_w, lin_b, cp, out_lin_p):
    """Zero-pad every weight/bias to lane-dense [CP, CP] / [1, CP] and stack layers."""
    w_stack = jnp.stack(
        [_pad_to(w, (cp, cp)) for (w, _) in conv_params]
    ).astype(jnp.bfloat16)                                       # [L, CP, CP]
    b_stack = jnp.stack(
        [_pad_to(b, (1, cp)) for (_, b) in conv_params]
    ).astype(jnp.float32)                                        # [L, 1, CP]
    lw_p = _pad_to(lin_w, (cp, out_lin_p)).astype(jnp.bfloat16)  # [CP, OUT_P]
    lb_p = _pad_to(lin_b, (1, out_lin_p)).astype(jnp.float32)    # [1, OUT_P]
    return w_stack, b_stack, lw_p, lb_p


def gnn_graph_forward(params, x, a_hat, pool_mat, out_lin, out_channels):
    """Full GNN_Graph forward (Benchmark_GCN, eval mode). Returns (out, None, acts)."""
    num_nodes = x.shape[0]
    num_graphs = pool_mat.shape[0]

    cp = 128                                  # lane-dense feature width
    out_lin_p = 128                           # lane-dense final output width
    np_ = _round_up(num_nodes, 128)           # lane-dense node count (A_hat lanes)
    gp = _round_up(num_graphs, 8)             # sublane-aligned graph count

    a_hat_p = _pad_to(a_hat, (np_, np_)).astype(jnp.bfloat16)
    x_p = _pad_to(x, (np_, cp)).astype(jnp.bfloat16)
    pool_p = _pad_to(pool_mat, (gp, np_)).astype(jnp.bfloat16)
    w_stack, b_stack, lw_p, lb_p = pack_params(
        params["convs"], params["lin_w"], params["lin_b"], cp, out_lin_p)

    out_p, acts_p = fused_gnn_forward(
        a_hat_p, x_p, w_stack, b_stack, pool_p, lw_p, lb_p)

    out = out_p[:num_graphs, :out_lin]
    final_conv_acts = acts_p[:num_nodes, :out_channels]
    return out, None, final_conv_acts


# ---------------------------------------------------------------------------
# Driver
# ---------------------------------------------------------------------------
if __name__ == "__main__":
    key = jax.random.PRNGKey(0)

    # Small, module-consistent shapes.
    num_nodes = 16
    in_channels = 8
    hidden_channels = 32
    out_channels = 32
    num_layers = 3
    in_lin = out_channels          # lin takes pooled node features
    out_lin = 4
    num_graphs = 2
    num_edges = 40

    k_x, k_e, k_p = jax.random.split(key, 3)

    # Node features [N, C_in]
    x = jax.random.normal(k_x, (num_nodes, in_channels), jnp.float32)
    # Random directed edges [2, E]
    edge_index = jax.random.randint(k_e, (2, num_edges), 0, num_nodes, jnp.int32)
    # Batch assignment: first half of nodes -> graph 0, rest -> graph 1
    batch = jnp.concatenate(
        [jnp.zeros(num_nodes // 2, jnp.int32),
         jnp.ones(num_nodes - num_nodes // 2, jnp.int32)]
    )

    # Deterministic parameters (GCNConv weight/bias per layer + final Linear).
    layer_dims = [in_channels] + [hidden_channels] * (num_layers - 1) + [out_channels]
    conv_params = []
    for li in range(num_layers):
        k_p, sub = jax.random.split(k_p)
        conv_params.append(init_linear(sub, layer_dims[li], layer_dims[li + 1]))
    k_p, sub = jax.random.split(k_p)
    lin_w, lin_b = init_linear(sub, in_lin, out_lin)

    params = {"convs": conv_params, "lin_w": lin_w, "lin_b": lin_b}

    a_hat = build_norm_adj(edge_index, num_nodes)
    pool_mat = build_pool_matrix(batch, num_graphs)

    out, attn_weights, final_acts = gnn_graph_forward(
        params, x, a_hat, pool_mat, out_lin, out_channels)
    out = jax.block_until_ready(out)
    final_acts = jax.block_until_ready(final_acts)

    assert out.shape == (num_graphs, out_lin)
    assert final_acts.shape == (num_nodes, out_channels)
    assert attn_weights is None
    assert bool(jnp.all(jnp.isfinite(out)))
    print("KERNEL_OK")
</pallas_src>

<mosaic_0001>
module attributes {stable_mosaic.version = 11 : i64} {
  func.func @_fused_gnn_kernel(%arg0: i32, %arg1: memref<128x128xbf16, #tpu.memory_space<vmem>>, %arg2: memref<128x128xbf16, #tpu.memory_space<vmem>>, %arg3: memref<3x128x128xbf16, #tpu.memory_space<vmem>>, %arg4: memref<3x1x128xf32, #tpu.memory_space<vmem>>, %arg5: memref<8x128xbf16, #tpu.memory_space<vmem>>, %arg6: memref<128x128xbf16, #tpu.memory_space<vmem>>, %arg7: memref<1x128xf32, #tpu.memory_space<vmem>>, %arg8: memref<8x128xf32, #tpu.memory_space<vmem>>, %arg9: memref<128x128xf32, #tpu.memory_space<vmem>>) attributes {dimension_semantics = [#tpu.dimension_semantics<arbitrary>], iteration_bounds = array<i64: 1>, scalar_prefetch = 0 : i64, scratch_operands = 0 : i64, tpu.core_type = #tpu.core_type<tc>, window_params = [{pipeline_mode = #tpu.pipeline_mode<synchronous>, transform_indices = @transform_0, window_bounds = array<i64: 128, 128>}, {pipeline_mode = #tpu.pipeline_mode<synchronous>, transform_indices = @transform_1, window_bounds = array<i64: 128, 128>}, {pipeline_mode = #tpu.pipeline_mode<synchronous>, transform_indices = @transform_2, window_bounds = array<i64: 3, 128, 128>}, {pipeline_mode = #tpu.pipeline_mode<synchronous>, transform_indices = @transform_3, window_bounds = array<i64: 3, 1, 128>}, {pipeline_mode = #tpu.pipeline_mode<synchronous>, transform_indices = @transform_4, window_bounds = array<i64: 8, 128>}, {pipeline_mode = #tpu.pipeline_mode<synchronous>, transform_indices = @transform_5, window_bounds = array<i64: 128, 128>}, {pipeline_mode = #tpu.pipeline_mode<synchronous>, transform_indices = @transform_6, window_bounds = array<i64: 1, 128>}, {pipeline_mode = #tpu.pipeline_mode<synchronous>, transform_indices = @transform_7, window_bounds = array<i64: 8, 128>}, {pipeline_mode = #tpu.pipeline_mode<synchronous>, transform_indices = @transform_8, window_bounds = array<i64: 128, 128>}]} {
    %c0 = arith.constant 0 : index
    %c0_0 = arith.constant 0 : index
    %0 = vector.load %arg2[%c0, %c0_0] : memref<128x128xbf16, #tpu.memory_space<vmem>>, vector<128x128xbf16>
    %c0_1 = arith.constant 0 : index
    %c0_2 = arith.constant 0 : index
    %1 = vector.load %arg1[%c0_1, %c0_2] : memref<128x128xbf16, #tpu.memory_space<vmem>>, vector<128x128xbf16>
    %c0_3 = arith.constant 0 : index
    %c0_4 = arith.constant 0 : index
    %c0_5 = arith.constant 0 : index
    %2 = vector.load %arg3[%c0_3, %c0_4, %c0_5] : memref<3x128x128xbf16, #tpu.memory_space<vmem>>, vector<1x128x128xbf16>
    %3 = vector.shape_cast %2 : vector<1x128x128xbf16> to vector<128x128xbf16>
    %cst = arith.constant dense<0.000000e+00> : vector<128x128xf32>
    %4 = tpu.matmul %0, %3, %cst {dimension_numbers = #tpu.dot_dimension_numbers<[1], [0], [0], [1], [0, 0, 1, 1], [], []>} : vector<128x128xbf16>, vector<128x128xbf16>, vector<128x128xf32> -> vector<128x128xf32>
    %5 = arith.truncf %4 : vector<128x128xf32> to vector<128x128xbf16>
    %cst_6 = arith.constant dense<0.000000e+00> : vector<128x128xf32>
    %6 = tpu.matmul %1, %5, %cst_6 {dimension_numbers = #tpu.dot_dimension_numbers<[1], [0], [0], [1], [0, 0, 1, 1], [], []>} : vector<128x128xbf16>, vector<128x128xbf16>, vector<128x128xf32> -> vector<128x128xf32>
    %c0_7 = arith.constant 0 : index
    %c0_8 = arith.constant 0 : index
    %c0_9 = arith.constant 0 : index
    %7 = vector.load %arg4[%c0_7, %c0_8, %c0_9] : memref<3x1x128xf32, #tpu.memory_space<vmem>>, vector<1x1x128xf32>
    %8 = vector.shape_cast %7 : vector<1x1x128xf32> to vector<1x128xf32>
    %9 = vector.broadcast %8 : vector<1x128xf32> to vector<128x128xf32>
    %10 = arith.addf %6, %9 : vector<128x128xf32>
    %cst_10 = arith.constant 0.000000e+00 : f32
    %11 = vector.broadcast %cst_10 : f32 to vector<128x128xf32>
    %12 = arith.cmpf ogt, %10, %11 : vector<128x128xf32>
    %cst_11 = arith.constant 0.000000e+00 : f32
    %13 = vector.broadcast %cst_11 : f32 to vector<128x128xf32>
    %14 = arith.minimumf %10, %13 : vector<128x128xf32>
    %15 = math.exp %14 : vector<128x128xf32>
    %cst_12 = arith.constant 1.000000e+00 : f32
    %16 = vector.broadcast %cst_12 : f32 to vector<128x128xf32>
    %17 = arith.subf %15, %16 : vector<128x128xf32>
    %18 = arith.select %12, %10, %17 : vector<128x128xi1>, vector<128x128xf32>
    %19 = arith.truncf %18 : vector<128x128xf32> to vector<128x128xbf16>
    %c1 = arith.constant 1 : index
    %c0_13 = arith.constant 0 : index
    %c0_14 = arith.constant 0 : index
    %20 = vector.load %arg3[%c1, %c0_13, %c0_14] : memref<3x128x128xbf16, #tpu.memory_space<vmem>>, vector<1x128x128xbf16>
    %21 = vector.shape_cast %20 : vector<1x128x128xbf16> to vector<128x128xbf16>
    %cst_15 = arith.constant dense<0.000000e+00> : vector<128x128xf32>
    %22 = tpu.matmul %19, %21, %cst_15 {dimension_numbers = #tpu.dot_dimension_numbers<[1], [0], [0], [1], [0, 0, 1, 1], [], []>} : vector<128x128xbf16>, vector<128x128xbf16>, vector<128x128xf32> -> vector<128x128xf32>
    %23 = arith.truncf %22 : vector<128x128xf32> to vector<128x128xbf16>
    %cst_16 = arith.constant dense<0.000000e+00> : vector<128x128xf32>
    %24 = tpu.matmul %1, %23, %cst_16 {dimension_numbers = #tpu.dot_dimension_numbers<[1], [0], [0], [1], [0, 0, 1, 1], [], []>} : vector<128x128xbf16>, vector<128x128xbf16>, vector<128x128xf32> -> vector<128x128xf32>
    %c1_17 = arith.constant 1 : index
    %c0_18 = arith.constant 0 : index
    %c0_19 = arith.constant 0 : index
    %25 = vector.load %arg4[%c1_17, %c0_18, %c0_19] : memref<3x1x128xf32, #tpu.memory_space<vmem>>, vector<1x1x128xf32>
    %26 = vector.shape_cast %25 : vector<1x1x128xf32> to vector<1x128xf32>
    %27 = vector.broadcast %26 : vector<1x128xf32> to vector<128x128xf32>
    %28 = arith.addf %24, %27 : vector<128x128xf32>
    %cst_20 = arith.constant 0.000000e+00 : f32
    %29 = vector.broadcast %cst_20 : f32 to vector<128x128xf32>
    %30 = arith.cmpf ogt, %28, %29 : vector<128x128xf32>
    %cst_21 = arith.constant 0.000000e+00 : f32
    %31 = vector.broadcast %cst_21 : f32 to vector<128x128xf32>
    %32 = arith.minimumf %28, %31 : vector<128x128xf32>
    %33 = math.exp %32 : vector<128x128xf32>
    %cst_22 = arith.constant 1.000000e+00 : f32
    %34 = vector.broadcast %cst_22 : f32 to vector<128x128xf32>
    %35 = arith.subf %33, %34 : vector<128x128xf32>
    %36 = arith.select %30, %28, %35 : vector<128x128xi1>, vector<128x128xf32>
    %37 = arith.truncf %36 : vector<128x128xf32> to vector<128x128xbf16>
    %c2 = arith.constant 2 : index
    %c0_23 = arith.constant 0 : index
    %c0_24 = arith.constant 0 : index
    %38 = vector.load %arg3[%c2, %c0_23, %c0_24] : memref<3x128x128xbf16, #tpu.memory_space<vmem>>, vector<1x128x128xbf16>
    %39 = vector.shape_cast %38 : vector<1x128x128xbf16> to vector<128x128xbf16>
    %cst_25 = arith.constant dense<0.000000e+00> : vector<128x128xf32>
    %40 = tpu.matmul %37, %39, %cst_25 {dimension_numbers = #tpu.dot_dimension_numbers<[1], [0], [0], [1], [0, 0, 1, 1], [], []>} : vector<128x128xbf16>, vector<128x128xbf16>, vector<128x128xf32> -> vector<128x128xf32>
    %41 = arith.truncf %40 : vector<128x128xf32> to vector<128x128xbf16>
    %cst_26 = arith.constant dense<0.000000e+00> : vector<128x128xf32>
    %42 = tpu.matmul %1, %41, %cst_26 {dimension_numbers = #tpu.dot_dimension_numbers<[1], [0], [0], [1], [0, 0, 1, 1], [], []>} : vector<128x128xbf16>, vector<128x128xbf16>, vector<128x128xf32> -> vector<128x128xf32>
    %c2_27 = arith.constant 2 : index
    %c0_28 = arith.constant 0 : index
    %c0_29 = arith.constant 0 : index
    %43 = vector.load %arg4[%c2_27, %c0_28, %c0_29] : memref<3x1x128xf32, #tpu.memory_space<vmem>>, vector<1x1x128xf32>
    %44 = vector.shape_cast %43 : vector<1x1x128xf32> to vector<1x128xf32>
    %45 = vector.broadcast %44 : vector<1x128xf32> to vector<128x128xf32>
    %46 = arith.addf %42, %45 : vector<128x128xf32>
    %cst_30 = arith.constant 0.000000e+00 : f32
    %47 = vector.broadcast %cst_30 : f32 to vector<128x128xf32>
    %48 = arith.cmpf ogt, %46, %47 : vector<128x128xf32>
    %cst_31 = arith.constant 0.000000e+00 : f32
    %49 = vector.broadcast %cst_31 : f32 to vector<128x128xf32>
    %50 = arith.minimumf %46, %49 : vector<128x128xf32>
    %51 = math.exp %50 : vector<128x128xf32>
    %cst_32 = arith.constant 1.000000e+00 : f32
    %52 = vector.broadcast %cst_32 : f32 to vector<128x128xf32>
    %53 = arith.subf %51, %52 : vector<128x128xf32>
    %54 = arith.select %48, %46, %53 : vector<128x128xi1>, vector<128x128xf32>
    %55 = arith.truncf %54 : vector<128x128xf32> to vector<128x128xbf16>
    %c0_33 = arith.constant 0 : index
    %c0_34 = arith.constant 0 : index
    %56 = vector.load %arg9[%c0_33, %c0_34] : memref<128x128xf32, #tpu.memory_space<vmem>>, vector<128x128xf32>
    tpu.vector_store %arg9[%c0_33, %c0_34], %54 {strides = array<i32>} : memref<128x128xf32, #tpu.memory_space<vmem>>, vector<128x128xf32>,
    %c0_35 = arith.constant 0 : index
    %c0_36 = arith.constant 0 : index
    %57 = vector.load %arg5[%c0_35, %c0_36] : memref<8x128xbf16, #tpu.memory_space<vmem>>, vector<8x128xbf16>
    %cst_37 = arith.constant dense<0.000000e+00> : vector<8x128xf32>
    %58 = tpu.matmul %57, %55, %cst_37 {dimension_numbers = #tpu.dot_dimension_numbers<[1], [0], [0], [1], [0, 0, 1, 1], [], []>} : vector<8x128xbf16>, vector<128x128xbf16>, vector<8x128xf32> -> vector<8x128xf32>
    %59 = arith.truncf %58 : vector<8x128xf32> to vector<8x128xbf16>
    %c0_38 = arith.constant 0 : index
    %c0_39 = arith.constant 0 : index
    %60 = vector.load %arg6[%c0_38, %c0_39] : memref<128x128xbf16, #tpu.memory_space<vmem>>, vector<128x128xbf16>
    %cst_40 = arith.constant dense<0.000000e+00> : vector<8x128xf32>
    %61 = tpu.matmul %59, %60, %cst_40 {dimension_numbers = #tpu.dot_dimension_numbers<[1], [0], [0], [1], [0, 0, 1, 1], [], []>} : vector<8x128xbf16>, vector<128x128xbf16>, vector<8x128xf32> -> vector<8x128xf32>
    %c0_41 = arith.constant 0 : index
    %c0_42 = arith.constant 0 : index
    %62 = vector.load %arg7[%c0_41, %c0_42] : memref<1x128xf32, #tpu.memory_space<vmem>>, vector<1x128xf32>
    %63 = vector.broadcast %62 : vector<1x128xf32> to vector<8x128xf32>
    %64 = arith.addf %61, %63 : vector<8x128xf32>
    %c0_43 = arith.constant 0 : index
    %c0_44 = arith.constant 0 : index
    %65 = vector.load %arg8[%c0_43, %c0_44] : memref<8x128xf32, #tpu.memory_space<vmem>>, vector<8x128xf32>
    tpu.vector_store %arg8[%c0_43, %c0_44], %64 {strides = array<i32>} : memref<8x128xf32, #tpu.memory_space<vmem>>, vector<8x128xf32>,
    return
  }
  func.func @transform_0(%arg0: i32) -> (i32, i32) {
    %c0_i32 = arith.constant 0 : i32
    %c0_i32_0 = arith.constant 0 : i32
    %c0_i32_1 = arith.constant 0 : i32
    return %c0_i32, %c0_i32_0 : i32, i32
  }
  func.func @transform_1(%arg0: i32) -> (i32, i32) {
    %c0_i32 = arith.constant 0 : i32
    %c0_i32_0 = arith.constant 0 : i32
    %c0_i32_1 = arith.constant 0 : i32
    return %c0_i32, %c0_i32_0 : i32, i32
  }
  func.func @transform_2(%arg0: i32) -> (i32, i32, i32) {
    %c0_i32 = arith.constant 0 : i32
    %c0_i32_0 = arith.constant 0 : i32
    %c0_i32_1 = arith.constant 0 : i32
    %c0_i32_2 = arith.constant 0 : i32
    return %c0_i32, %c0_i32_0, %c0_i32_1 : i32, i32, i32
  }
  func.func @transform_3(%arg0: i32) -> (i32, i32, i32) {
    %c0_i32 = arith.constant 0 : i32
    %c0_i32_0 = arith.constant 0 : i32
    %c0_i32_1 = arith.constant 0 : i32
    %c0_i32_2 = arith.constant 0 : i32
    return %c0_i32, %c0_i32_0, %c0_i32_1 : i32, i32, i32
  }
  func.func @transform_4(%arg0: i32) -> (i32, i32) {
    %c0_i32 = arith.constant 0 : i32
    %c0_i32_0 = arith.constant 0 : i32
    %c0_i32_1 = arith.constant 0 : i32
    return %c0_i32, %c0_i32_0 : i32, i32
  }
  func.func @transform_5(%arg0: i32) -> (i32, i32) {
    %c0_i32 = arith.constant 0 : i32
    %c0_i32_0 = arith.constant 0 : i32
    %c0_i32_1 = arith.constant 0 : i32
    return %c0_i32, %c0_i32_0 : i32, i32
  }
  func.func @transform_6(%arg0: i32) -> (i32, i32) {
    %c0_i32 = arith.constant 0 : i32
    %c0_i32_0 = arith.constant 0 : i32
    %c0_i32_1 = arith.constant 0 : i32
    return %c0_i32, %c0_i32_0 : i32, i32
  }
  func.func @transform_7(%arg0: i32) -> (i32, i32) {
    %c0_i32 = arith.constant 0 : i32
    %c0_i32_0 = arith.constant 0 : i32
    %c0_i32_1 = arith.constant 0 : i32
    return %c0_i32, %c0_i32_0 : i32, i32
  }
  func.func @transform_8(%arg0: i32) -> (i32, i32) {
    %c0_i32 = arith.constant 0 : i32
    %c0_i32_0 = arith.constant 0 : i32
    %c0_i32_1 = arith.constant 0 : i32
    return %c0_i32, %c0_i32_0 : i32, i32
  }
}

</mosaic_0001>

<bundles_post_ra>
// kernel: fused_gnn_forward.1
= control target key start
LH: loop header
LB: loop body
LE: loop exit
PB: predicated region body
PF: predicated region fallthrough
CT: control target
= control target key end

     0   :  { %14 = vsyncpa [#allocation3], 0  ;;  %s2105_s0 = inlined_call_operand.hbm [shape: bf16[128,128], index: 0, kind: input, shape index: {}]   ;;  %s2106_s1 = inlined_call_operand.hbm [shape: bf16[128,128], index: 1, kind: input, shape index: {}]   ;;  %s2107_s2 = inlined_call_operand.hbm [shape: bf16[3,128,128], index: 2, kind: input, shape index: {}]   ;;  %s2108_s3 = inlined_call_operand.hbm [shape: f32[3,1,128], index: 3, kind: input, shape index: {}]   ;;  %s2109_s4 = inlined_call_operand.hbm [shape: bf16[8,128], index: 4, kind: input, shape index: {}]   ;;  %s2110_s5 = inlined_call_operand.hbm [shape: bf16[128,128], index: 5, kind: input, shape index: {}]   ;;  %s2111_s6 = inlined_call_operand.vmem [shape: f32[1,128], index: 6, kind: input, shape index: {}]   ;;  %s2112_s7 = inlined_call_operand.hbm [shape: f32[8,128], index: 7, kind: output, shape index: {0}]   ;;  %s2113_s8 = inlined_call_operand.hbm [shape: f32[128,128], index: 8, kind: output, shape index: {1}]  }
   0x1   :  { %15 = vsyncpa [#allocation6], 0 }
   0x2   :  { %16 = vsyncpa [#allocation9], 0 }
   0x3   :  { %17 = vsyncpa [#allocation12], 0 }
   0x4   :  { %18 = vsyncpa [#allocation4], 0 }
   0x5   :  { %19 = vsyncpa [#allocation15], 0  ;;  %s37_s29 = sshll.u32 %s2106_s1, 4  ;;  %s1861_s30 = smov [#allocation5]   ;;  %s38_s29 = int_to_ptr.hbm [resolvable:$true] %s37_s29 }
   0x6   :  { %s39_s9 = sshll.u32 %s1861_s30, 4  ;;  %s63_s12 = sshll.u32 %s2108_s3, 4  ;;  %s40_s9 = int_to_ptr.vmem [resolvable:$true] %s39_s9  ;;  %s64_s12 = int_to_ptr.hbm [resolvable:$true] %s63_s12 }
   0x7   :  { %s1862_s13 = smov 64   ;;  %s1863_s14 = smov 4  }
   0x8   :  { %45 = dma.hbm_to_vmem [thread:$0]  %s38_s29, 1024, %s40_s9, [#allocation6], %s1862_s13, %s1862_s13, %s1863_s14  }
   0x9   :  { %s1864_s15 = smov [#allocation8]   ;;  %s1865_s17 = smov 16  }
   0xa   :  { %s65_s16 = sshll.u32 %s1864_s15, 4  ;;  %s1866_s1 = smov 1   ;;  %s66_s16 = int_to_ptr.vmem [resolvable:$true] %s65_s16 }
   0xb   :  { %71 = dma.hbm_to_vmem [thread:$0]  %s64_s12, 48, %s66_s16, [#allocation9], %s1865_s17, %s1865_s17, %s1866_s1  }
   0xc   :  { %s24_s20 = sshll.u32 %s2105_s0, 4  ;;  %s1867_s21 = smov [#allocation2]   ;;  %s25_s20 = int_to_ptr.hbm [resolvable:$true] %s24_s20 }
   0xd   :  { %s26_s3 = sshll.u32 %s1867_s21, 4  ;;  %s50_s24 = sshll.u32 %s2107_s2, 4  ;;  %s27_s3 = int_to_ptr.vmem [resolvable:$true] %s26_s3  ;;  %s51_s24 = int_to_ptr.hbm [resolvable:$true] %s50_s24 }
   0xe   :  { %32 = dma.hbm_to_vmem [thread:$0]  %s25_s20, 1024, %s27_s3, [#allocation3], %s1862_s13, %s1862_s13, %s1863_s14  }
   0xf   :  { %s1868_s25 = smov [#allocation7]   ;;  %s77_s29 = sshll.u32 %s2109_s4, 4  ;;  %s78_s29 = int_to_ptr.hbm [resolvable:$true] %s77_s29 }
  0x10   :  { %s52_s26 = sshll.u32 %s1868_s25, 4  ;;  %s87_s2 = sshll.u32 %s2110_s5, 4  ;;  %s53_s26 = int_to_ptr.vmem [resolvable:$true] %s52_s26  ;;  %s88_s2 = int_to_ptr.hbm [resolvable:$true] %s87_s2 }
  0x11   :  { %58 = dma.hbm_to_vmem [thread:$0]  %s51_s24, 3072, %s53_s26, [#allocation6], %s1862_s13, %s1862_s13, %s1863_s14  }
  0x12   :  { %s1869_s9 = smov [#allocation10]   ;;  %s1870_s11 = smov [#allocation11]  }
  0x13   :  { %s79_s10 = sshll.u32 %s1869_s9, 4  ;;  %s89_s12 = sshll.u32 %s1870_s11, 4  ;;  %s80_s10 = int_to_ptr.vmem [resolvable:$true] %s79_s10  ;;  %s90_s12 = int_to_ptr.vmem [resolvable:$true] %s89_s12 }
  0x14   :  { %82 = dma.hbm_to_vmem [thread:$0]  %s78_s29, 64, %s80_s10, [#allocation9]  }
  0x15   :  { %95 = dma.hbm_to_vmem [thread:$0]  %s88_s2, 1024, %s90_s12, [#allocation12], %s1862_s13, %s1862_s13, %s1863_s14  }
  0x16   :  { %1849 = dma.done.wait [#allocation3], 1024  }
  0x17   :  { %1850 = vsyncadd [#allocation3], 4294966272 }
  0x18   :  { %1851 = dma.done.wait [#allocation6], 4096  }
  0x19   :  { %1852 = vsyncadd [#allocation6], 4294963200 }
  0x1a   :  { %1853 = dma.done.wait [#allocation9], 112  }
  0x1b   :  { %1854 = vsyncadd [#allocation9], 4294967184 }
  0x1c   :  { %1855 = dma.done.wait [#allocation12], 1024  }
  0x1d   :  { %1856 = vsyncadd [#allocation12], 4294966272  ;;  %v1502_v0 = vld [vmem:[#allocation7 + $0x38] sm:$0xff]  ;;  %v1501_v1 = vld [vmem:[#allocation7 + $0x30] sm:$0xff]  ;;  %s1871_s4 = smov [#allocation14]   ;;  %s1218_s15 = sshll.u32 %s2113_s8, 4  ;;  %s1219_s15 = int_to_ptr.hbm [resolvable:$true] %s1218_s15 }
  0x1e   :  { %266 = vmatpush.bf16.msra.mxu0 %v1502_v0  ;;  %1527 = vmatpush.bf16.msra.mxu2 %v1502_v0  ;;  %v1500_v2 = vld [vmem:[#allocation7 + $0x28] sm:$0xff]  ;;  %v1499_v3 = vld [vmem:[#allocation7 + $0x20] sm:$0xff]  ;;  %v1498_v4 = vld [vmem:[#allocation7 + $0x18] sm:$0xff]  ;;  %s1216_s5 = sshll.u32 %s1871_s4, 4  ;;  %s1872_s16 = smov 128   ;;  %s1217_s5 = int_to_ptr.vmem [resolvable:$true] %s1216_s5 }
  0x1f   :  { %v1497_v5 = vld [vmem:[#allocation7 + $0x10] sm:$0xff]  ;;  %v1496_v6 = vld [vmem:[#allocation7 + $0x8] sm:$0xff]  ;;  %v1495_v7 = vld [vmem:[#allocation7] sm:$0xff]  ;;  %s1873_s17 = smov 8   ;;  %s1874_s19 = smov [#allocation13]  }
  0x20   :  { %v1479_v8 = vld [vmem:[#allocation5] sm:$0xff]  ;;  %v1484_v9 = vld [vmem:[#allocation5 + $0x28] sm:$0xff]  ;;  %v1485_v11 = vld [vmem:[#allocation5 + $0x30] sm:$0xff]  ;;  %s1206_s20 = sshll.u32 %s1874_s19, 4  ;;  %s1208_s22 = sshll.u32 %s2112_s7, 4  ;;  %s1207_s20 = int_to_ptr.vmem [resolvable:$true] %s1206_s20  ;;  %s1209_s22 = int_to_ptr.hbm [resolvable:$true] %s1208_s22 }
  0x21   :  { %v1480_v10 = vld [vmem:[#allocation5 + $0x8] sm:$0xff]  ;;  %v1481_v12 = vld [vmem:[#allocation5 + $0x10] sm:$0xff]  ;;  %v1486_v13 = vld [vmem:[#allocation5 + $0x38] sm:$0xff] }
  0x22   :  { %267 = vmatpush.bf16.msra.mxu0 %v1501_v1  ;;  %1528 = vmatpush.bf16.msra.mxu2 %v1501_v1  ;;  %v1482_v14 = vld [vmem:[#allocation5 + $0x18] sm:$0xff]  ;;  %v1483_v15 = vld [vmem:[#allocation5 + $0x20] sm:$0xff]  ;;  %v1953_v41 = vld [vmem:[#allocation2 + $0x8] sm:$0xff] }
  0x23   :  { %v1950_v40 = vld [vmem:[#allocation2] sm:$0xff]  ;;  %v1956_v42 = vld [vmem:[#allocation2 + $0x28] sm:$0xff]  ;;  %v1959_v43 = vld [vmem:[#allocation2 + $0x10] sm:$0xff] }
  0x24   :  { %v1962_v44 = vld [vmem:[#allocation2 + $0x30] sm:$0xff]  ;;  %v1510_v45 = vld [vmem:[#allocation7 + $0x78] sm:$0xff]  ;;  %v1971_v48 = vld [vmem:[#allocation2 + $0x20] sm:$0xff] }
  0x25   :  { %v1965_v46 = vld [vmem:[#allocation2 + $0x18] sm:$0xff]  ;;  %v1509_v49 = vld [vmem:[#allocation7 + $0x70] sm:$0xff]  ;;  %v1508_v50 = vld [vmem:[#allocation7 + $0x68] sm:$0xff] }
  0x26   :  { %268 = vmatpush.bf16.msra.mxu0 %v1500_v2  ;;  %1529 = vmatpush.bf16.msra.mxu2 %v1500_v2  ;;  %v1967_v47 = vld [vmem:[#allocation2 + $0x38] sm:$0xff]  ;;  %v1507_v51 = vld [vmem:[#allocation7 + $0x60] sm:$0xff]  ;;  %v1505_v53 = vld [vmem:[#allocation7 + $0x50] sm:$0xff] }
  0x27   :  { %v1506_v52 = vld [vmem:[#allocation7 + $0x58] sm:$0xff]  ;;  %v1504_v54 = vld [vmem:[#allocation7 + $0x48] sm:$0xff]  ;;  %v1503_v55 = vld [vmem:[#allocation7 + $0x40] sm:$0xff] }
  0x28   :  { %v1974_v56 = vld [vmem:[#allocation8] ss:$0 sm:$0xff] }
  0x2a   :  { %269 = vmatpush.bf16.msra.mxu0 %v1499_v3  ;;  %1530 = vmatpush.bf16.msra.mxu2 %v1499_v3 }
  0x2e   :  { %270 = vmatpush.bf16.msra.mxu0 %v1498_v4  ;;  %1531 = vmatpush.bf16.msra.mxu2 %v1498_v4 }
  0x32   :  { %271 = vmatpush.bf16.msra.mxu0 %v1497_v5  ;;  %1532 = vmatpush.bf16.msra.mxu2 %v1497_v5 }
  0x36   :  { %272 = vmatpush.bf16.msra.mxu0 %v1496_v6  ;;  %1533 = vmatpush.bf16.msra.mxu2 %v1496_v6 }
  0x3a   :  { %273 = vmatpush.bf16.msra.mxu0 %v1495_v7  ;;  %1534 = vmatpush.bf16.msra.mxu2 %v1495_v7 }
  0x3d   :  { %274 = vmatmul.bf16.vlgmr.msra.gmra.mxu0 %v1479_v8  ;;  %299 = vmatmul.bf16.vlgmr.msra.gmra.mxu2 %v1484_v9 }
  0x3e   :  { %593 = vmatpush.bf16.msrb.mxu2 %v1510_v45 }
  0x42   :  { %594 = vmatpush.bf16.msrb.mxu2 %v1509_v49 }
  0x46   :  { %595 = vmatpush.bf16.msrb.mxu2 %v1508_v50 }
  0x4a   :  { %596 = vmatpush.bf16.msrb.mxu2 %v1507_v51 }
  0x4d   :  { %279 = vmatmul.bf16.gmra.mxu0 %v1480_v10  ;;  %304 = vmatmul.bf16.gmra.mxu2 %v1485_v11 }
  0x4e   :  { %597 = vmatpush.bf16.msrb.mxu2 %v1506_v52 }
  0x52   :  { %598 = vmatpush.bf16.msrb.mxu2 %v1505_v53 }
  0x56   :  { %599 = vmatpush.bf16.msrb.mxu2 %v1504_v54 }
  0x5a   :  { %600 = vmatpush.bf16.msrb.mxu2 %v1503_v55 }
  0x5d   :  { %284 = vmatmul.bf16.gmra.mxu0 %v1481_v12  ;;  %309 = vmatmul.bf16.gmra.mxu2 %v1486_v13 }
  0x6d   :  { %289 = vmatmul.bf16.gmra.mxu0 %v1482_v14 }
  0x7d   :  { %294 = vmatmul.bf16.gmra.mxu0 %v1483_v15 }
  0xba   :  { %v275_v16 = vpop.f32.mrf.mxu0 }
  0xc0   :  { %v300_v17 = vpop.f32.mrf.mxu2 }
  0xc2   :  { %v277_v18 = vpop.f32.mrf.mxu0 }
  0xc3   :  { %v315_v39 = vpack.c.bf16 %v277_v18, %v275_v16 }
  0xc8   :  { %v302_v19 = vpop.f32.mrf.mxu2 }
  0xc9   :  { %v320_v31 = vpack.c.bf16 %v302_v19, %v300_v17 }
  0xca   :  { %v280_v20 = vpop.f32.mrf.mxu0 }
  0xd0   :  { %v305_v21 = vpop.f32.mrf.mxu2 }
  0xd2   :  { %v282_v22 = vpop.f32.mrf.mxu0 }
  0xd3   :  { %v316_v38 = vpack.c.bf16 %v282_v22, %v280_v20 }
  0xd8   :  { %v307_v23 = vpop.f32.mrf.mxu2 }
  0xd9   :  { %v321_v30 = vpack.c.bf16 %v307_v23, %v305_v21 }
  0xda   :  { %v285_v24 = vpop.f32.mrf.mxu0 }
  0xe0   :  { %v310_v25 = vpop.f32.mrf.mxu2 }
  0xe2   :  { %v287_v26 = vpop.f32.mrf.mxu0 }
  0xe3   :  { %v317_v37 = vpack.c.bf16 %v287_v26, %v285_v24 }
  0xe8   :  { %v312_v27 = vpop.f32.mrf.mxu2 }
  0xe9   :  { %v322_v28 = vpack.c.bf16 %v312_v27, %v310_v25 }
  0xea   :  { %v290_v29 = vpop.f32.mrf.mxu0 }
  0xeb   :  { %375 = vmatpush.bf16.msra.mxu1 %v322_v28  ;;  %1535 = vmatpush.bf16.msra.mxu3 %v322_v28 }
  0xef   :  { %376 = vmatpush.bf16.msra.mxu1 %v321_v30  ;;  %1536 = vmatpush.bf16.msra.mxu3 %v321_v30 }
  0xf2   :  { %v292_v32 = vpop.f32.mrf.mxu0 }
  0xf3   :  { %377 = vmatpush.bf16.msra.mxu1 %v320_v31  ;;  %1537 = vmatpush.bf16.msra.mxu3 %v320_v31  ;;  %v318_v36 = vpack.c.bf16 %v292_v32, %v290_v29 }
  0xfa   :  { %v295_v33 = vpop.f32.mrf.mxu0 }
 0x102   :  { %v297_v34 = vpop.f32.mrf.mxu0 }
 0x103   :  { %v319_v35 = vpack.c.bf16 %v297_v34, %v295_v33 }
 0x105   :  { %378 = vmatpush.bf16.msra.mxu1 %v319_v35  ;;  %1538 = vmatpush.bf16.msra.mxu3 %v319_v35 }
 0x109   :  { %379 = vmatpush.bf16.msra.mxu1 %v318_v36  ;;  %1539 = vmatpush.bf16.msra.mxu3 %v318_v36 }
 0x10d   :  { %380 = vmatpush.bf16.msra.mxu1 %v317_v37  ;;  %1540 = vmatpush.bf16.msra.mxu3 %v317_v37 }
 0x111   :  { %381 = vmatpush.bf16.msra.mxu1 %v316_v38  ;;  %1541 = vmatpush.bf16.msra.mxu3 %v316_v38 }
 0x115   :  { %382 = vmatpush.bf16.msra.mxu1 %v315_v39  ;;  %1542 = vmatpush.bf16.msra.mxu3 %v315_v39 }
 0x118   :  { %383 = vmatmul.bf16.vlgmr.msra.gmra.mxu1 %v1950_v40  ;;  %408 = vmatmul.bf16.vlgmr.msra.gmra.mxu3 %v1956_v42 }
 0x128   :  { %388 = vmatmul.bf16.gmra.mxu1 %v1953_v41  ;;  %413 = vmatmul.bf16.gmra.mxu3 %v1962_v44 }
 0x138   :  { %393 = vmatmul.bf16.gmra.mxu1 %v1959_v43  ;;  %418 = vmatmul.bf16.gmra.mxu3 %v1967_v47 }
 0x148   :  { %398 = vmatmul.bf16.gmra.mxu1 %v1965_v46 }
 0x158   :  { %403 = vmatmul.bf16.gmra.mxu1 %v1971_v48 }
 0x195   :  { %v384_v57 = vpop.f32.mrf.mxu1 }
 0x196   :  { %v385_v58 = vadd.f32 %v1974_v56, %v384_v57 }
 0x198   :  { %v440_v59 = vmin.f32 %v385_v58, 0.0  ;;  %vm424_vm0 = vcmp.gt.f32.partialorder %v385_v58, 0.0 }
 0x19a   :  { %v456_v60 = vmul.f32 1.442695, %v440_v59 }
 0x19b   :  { %v409_v45 = vpop.f32.mrf.mxu3 }
 0x19c   :  { %1561 = vpow2.f32 %v456_v60 }
 0x19d   :  { %v386_v61 = vpop.f32.mrf.mxu1 }
 0x19e   :  { %v387_v62 = vadd.f32 %v1974_v56, %v386_v61 }
 0x1a0   :  { %v441_v63 = vmin.f32 %v387_v62, 0.0  ;;  %vm425_vm1 = vcmp.gt.f32.partialorder %v387_v62, 0.0 }
 0x1a2   :  { %v458_v0 = vmul.f32 1.442695, %v441_v63  ;;  %v1562_v2 = vpop.eup %1561 }
 0x1a3   :  { %v1335_v5 = vadd.f32 -1.0, %v1562_v2  ;;  %v411_v59 = vpop.f32.mrf.mxu3 }
 0x1a4   :  { %1563 = vpow2.f32 %v458_v0 }
 0x1a5   :  { %v389_v1 = vpop.f32.mrf.mxu1  ;;  %v504_v10 = vsel %vm424_vm0, %v385_v58, %v1335_v5 }
 0x1a6   :  { %v390_v3 = vadd.f32 %v1974_v56, %v389_v1 }
 0x1a8   :  { %v442_v4 = vmin.f32 %v390_v3, 0.0  ;;  %vm426_vm2 = vcmp.gt.f32.partialorder %v390_v3, 0.0 }
 0x1aa   :  { %v1564_v6 = vpop.eup %1563  ;;  %v460_v8 = vmul.f32 1.442695, %v442_v4 }
 0x1ab   :  { %v1336_v7 = vadd.f32 -1.0, %v1564_v6 }
 0x1ac   :  { %1565 = vpow2.f32 %v460_v8  ;;  %v414_v8 = vpop.f32.mrf.mxu3 }
 0x1ad   :  { %v391_v9 = vpop.f32.mrf.mxu1  ;;  %v505_v11 = vsel %vm425_vm1, %v387_v62, %v1336_v7  ;;  %v410_v7 = vadd.f32 %v1974_v56, %v409_v45 }
 0x1ae   :  { %v392_v12 = vadd.f32 %v1974_v56, %v391_v9  ;;  %v520_v13 = vpack.c.bf16 %v505_v11, %v504_v10  ;;  %v412_v9 = vadd.f32 %v1974_v56, %v411_v59 }
 0x1af   :  { %v450_v11 = vmin.f32 %v410_v7, 0.0  ;;  %vm434_vm10 = vcmp.gt.f32.partialorder %v410_v7, 0.0 }
 0x1b0   :  { %v443_v14 = vmin.f32 %v392_v12, 0.0  ;;  %601 = vmatmul.bf16.vlgmr.msrb.gmra.mxu2 %v520_v13  ;;  %vm427_vm3 = vcmp.gt.f32.partialorder %v392_v12, 0.0  ;;  %v451_v13 = vmin.f32 %v412_v9, 0.0  ;;  %vm435_vm11 = vcmp.gt.f32.partialorder %v412_v9, 0.0 }
 0x1b2   :  { %v462_v15 = vmul.f32 1.442695, %v443_v14  ;;  %v1566_v17 = vpop.eup %1565  ;;  %v476_v14 = vmul.f32 1.442695, %v450_v11 }
 0x1b3   :  { %v1337_v20 = vadd.f32 -1.0, %v1566_v17  ;;  %v478_v17 = vmul.f32 1.442695, %v451_v13 }
 0x1b4   :  { %1567 = vpow2.f32 %v462_v15 }
 0x1b5   :  { %v394_v16 = vpop.f32.mrf.mxu1  ;;  %v506_v25 = vsel %vm426_vm2, %v390_v3, %v1337_v20 }
 0x1b6   :  { %v395_v18 = vadd.f32 %v1974_v56, %v394_v16 }
 0x1b8   :  { %v444_v19 = vmin.f32 %v395_v18, 0.0  ;;  %vm428_vm4 = vcmp.gt.f32.partialorder %v395_v18, 0.0 }
 0x1ba   :  { %v1568_v21 = vpop.eup %1567  ;;  %v464_v23 = vmul.f32 1.442695, %v444_v19 }
 0x1bb   :  { %v1338_v22 = vadd.f32 -1.0, %v1568_v21 }
 0x1bc   :  { %1569 = vpow2.f32 %v464_v23  ;;  %v415_v23 = vadd.f32 %v1974_v56, %v414_v8 }
 0x1bd   :  { %v396_v24 = vpop.f32.mrf.mxu1  ;;  %v507_v26 = vsel %vm427_vm3, %v392_v12, %v1338_v22 }
 0x1be   :  { %v397_v27 = vadd.f32 %v1974_v56, %v396_v24  ;;  %v521_v28 = vpack.c.bf16 %v507_v26, %v506_v25  ;;  %vm436_vm12 = vcmp.gt.f32.partialorder %v415_v23, 0.0 }
 0x1c0   :  { %v445_v29 = vmin.f32 %v397_v27, 0.0  ;;  %606 = vmatmul.bf16.gmra.mxu2 %v521_v28  ;;  %vm429_vm5 = vcmp.gt.f32.partialorder %v397_v27, 0.0 }
 0x1c2   :  { %v466_v30 = vmul.f32 1.442695, %v445_v29  ;;  %v1570_v32 = vpop.eup %1569 }
 0x1c3   :  { %v1339_v35 = vadd.f32 -1.0, %v1570_v32 }
 0x1c4   :  { %1571 = vpow2.f32 %v466_v30 }
 0x1c5   :  { %v399_v31 = vpop.f32.mrf.mxu1  ;;  %v508_v49 = vsel %vm428_vm4, %v395_v18, %v1339_v35  ;;  %v416_v18 = vpop.f32.mrf.mxu3 }
 0x1c6   :  { %v400_v33 = vadd.f32 %v1974_v56, %v399_v31  ;;  %v417_v24 = vadd.f32 %v1974_v56, %v416_v18 }
 0x1c8   :  { %v446_v34 = vmin.f32 %v400_v33, 0.0  ;;  %vm430_vm6 = vcmp.gt.f32.partialorder %v400_v33, 0.0  ;;  %v453_v29 = vmin.f32 %v417_v24, 0.0  ;;  %vm437_vm13 = vcmp.gt.f32.partialorder %v417_v24, 0.0 }
 0x1ca   :  { %v1572_v36 = vpop.eup %1571  ;;  %v468_v38 = vmul.f32 1.442695, %v446_v34 }
 0x1cb   :  { %v1340_v37 = vadd.f32 -1.0, %v1572_v36 }
 0x1cc   :  { %1573 = vpow2.f32 %v468_v38 }
 0x1cd   :  { %v401_v39 = vpop.f32.mrf.mxu1  ;;  %v509_v50 = vsel %vm429_vm5, %v397_v27, %v1340_v37  ;;  %v452_v27 = vmin.f32 %v415_v23, 0.0  ;;  %v419_v28 = vpop.f32.mrf.mxu3 }
 0x1ce   :  { %v402_v51 = vadd.f32 %v1974_v56, %v401_v39  ;;  %v522_v52 = vpack.c.bf16 %v509_v50, %v508_v49  ;;  %v420_v38 = vadd.f32 %v1974_v56, %v419_v28  ;;  %v1516_v28 = vld [vmem:[#allocation7 + $0xa8] sm:$0xff] }
 0x1cf   :  { %v480_v32 = vmul.f32 1.442695, %v452_v27  ;;  %v1517_v27 = vld [vmem:[#allocation7 + $0xb0] sm:$0xff] }
 0x1d0   :  { %v447_v53 = vmin.f32 %v402_v51, 0.0  ;;  %611 = vmatmul.bf16.gmra.mxu2 %v522_v52  ;;  %vm431_vm7 = vcmp.gt.f32.partialorder %v402_v51, 0.0  ;;  %v454_v50 = vmin.f32 %v420_v38, 0.0  ;;  %vm438_vm14 = vcmp.gt.f32.partialorder %v420_v38, 0.0 }
 0x1d2   :  { %v470_v54 = vmul.f32 1.442695, %v447_v53  ;;  %v1574_v57 = vpop.eup %1573 }
 0x1d3   :  { %v1341_v61 = vadd.f32 -1.0, %v1574_v57 }
 0x1d4   :  { %1575 = vpow2.f32 %v470_v54  ;;  %v484_v54 = vmul.f32 1.442695, %v454_v50 }
 0x1d5   :  { %v404_v55 = vpop.f32.mrf.mxu1  ;;  %v510_v2 = vsel %vm430_vm6, %v400_v33, %v1341_v61  ;;  %v482_v33 = vmul.f32 1.442695, %v453_v29  ;;  %v421_v37 = vpop.f32.mrf.mxu3  ;;  %v1515_v29 = vld [vmem:[#allocation7 + $0xa0] sm:$0xff] }
 0x1d6   :  { %v405_v58 = vadd.f32 %v1974_v56, %v404_v55  ;;  %v422_v39 = vadd.f32 %v1974_v56, %v421_v37 }
 0x1d8   :  { %v448_v60 = vmin.f32 %v405_v58, 0.0  ;;  %vm432_vm8 = vcmp.gt.f32.partialorder %v405_v58, 0.0  ;;  %vm439_vm15 = vcmp.gt.f32.partialorder %v422_v39, 0.0 }
 0x1da   :  { %v1576_v62 = vpop.eup %1575  ;;  %v472_v0 = vmul.f32 1.442695, %v448_v60 }
 0x1db   :  { %v1342_v63 = vadd.f32 -1.0, %v1576_v62 }
 0x1dc   :  { %1577 = vpow2.f32 %v472_v0 }
 0x1dd   :  { %v406_v1 = vpop.f32.mrf.mxu1  ;;  %v511_v3 = vsel %vm431_vm7, %v402_v51, %v1342_v63  ;;  %v455_v51 = vmin.f32 %v422_v39, 0.0 }
 0x1de   :  { %v407_v4 = vadd.f32 %v1974_v56, %v406_v1  ;;  %v523_v5 = vpack.c.bf16 %v511_v3, %v510_v2 }
 0x1df   :  { %v486_v55 = vmul.f32 1.442695, %v455_v51 }
 0x1e0   :  { %v449_v6 = vmin.f32 %v407_v4, 0.0  ;;  %616 = vmatmul.bf16.gmra.mxu2 %v523_v5  ;;  %vm433_vm9 = vcmp.gt.f32.partialorder %v407_v4, 0.0 }
 0x1e2   :  { %v474_v10 = vmul.f32 1.442695, %v449_v6  ;;  %v1578_v12 = vpop.eup %1577 }
 0x1e3   :  { %v1343_v15 = vadd.f32 -1.0, %v1578_v12 }
 0x1e4   :  { %1579 = vpow2.f32 %v474_v10 }
 0x1e5   :  { %1581 = vpow2.f32 %v476_v14  ;;  %v512_v20 = vsel %vm432_vm8, %v405_v58, %v1343_v15 }
 0x1e6   :  { %1583 = vpow2.f32 %v478_v17 }
 0x1e7   :  { %1585 = vpow2.f32 %v480_v32  ;;  %v1512_v32 = vld [vmem:[#allocation7 + $0x88] sm:$0xff] }
 0x1e8   :  { %1587 = vpow2.f32 %v482_v33  ;;  %v1511_v33 = vld [vmem:[#allocation7 + $0x80] sm:$0xff] }
 0x1e9   :  { %1589 = vpow2.f32 %v484_v54 }
 0x1ea   :  { %v1580_v16 = vpop.eup %1579  ;;  %1591 = vpow2.f32 %v486_v55 }
 0x1eb   :  { %v1344_v19 = vadd.f32 -1.0, %v1580_v16  ;;  %v1582_v25 = vpop.eup %1581 }
 0x1ec   :  { %v1584_v26 = vpop.eup %1583  ;;  %v1345_v30 = vadd.f32 -1.0, %v1582_v25 }
 0x1ed   :  { %v513_v21 = vsel %vm433_vm9, %v407_v4, %v1344_v19  ;;  %v1346_v31 = vadd.f32 -1.0, %v1584_v26  ;;  %v1586_v45 = vpop.eup %1585  ;;  %v1518_v26 = vld [vmem:[#allocation7 + $0xb8] sm:$0xff] }
 0x1ee   :  { %v524_v22 = vpack.c.bf16 %v513_v21, %v512_v20  ;;  %v514_v34 = vsel %vm434_vm10, %v410_v7, %v1345_v30  ;;  %v1588_v49 = vpop.eup %1587  ;;  %v1347_v52 = vadd.f32 -1.0, %v1586_v45  ;;  %873 = vmatpush.bf16.msrb.mxu0 %v1518_v26  ;;  %v1514_v30 = vld [vmem:[#allocation7 + $0x98] sm:$0xff] }
 0x1ef   :  { %v515_v35 = vsel %vm435_vm11, %v412_v9, %v1346_v31  ;;  %v1348_v53 = vadd.f32 -1.0, %v1588_v49  ;;  %v1590_v60 = vpop.eup %1589  ;;  %v1513_v31 = vld [vmem:[#allocation7 + $0x90] sm:$0xff] }
 0x1f0   :  { %621 = vmatmul.bf16.gmra.mxu2 %v524_v22  ;;  %v525_v36 = vpack.c.bf16 %v515_v35, %v514_v34  ;;  %v516_v57 = vsel %vm436_vm12, %v415_v23, %v1347_v52  ;;  %v1592_v61 = vpop.eup %1591  ;;  %v1349_v62 = vadd.f32 -1.0, %v1590_v60  ;;  %v2000_v34 = vld [vmem:[#allocation8 + $0x1] ss:$0 sm:$0xff] }
 0x1f1   :  { %v517_v58 = vsel %vm437_vm13, %v417_v24, %v1348_v53  ;;  %v1350_v56 = vadd.f32 -1.0, %v1592_v61 }
 0x1f2   :  { %v526_v59 = vpack.c.bf16 %v517_v58, %v516_v57  ;;  %v518_v63 = vsel %vm438_vm14, %v420_v38, %v1349_v62  ;;  %874 = vmatpush.bf16.msrb.mxu0 %v1517_v27 }
 0x1f3   :  { %v519_v0 = vsel %vm439_vm15, %v422_v39, %v1350_v56 }
 0x1f4   :  { %v527_v1 = vpack.c.bf16 %v519_v0, %v518_v63 }
 0x1f6   :  { %875 = vmatpush.bf16.msrb.mxu0 %v1516_v28 }
 0x1fa   :  { %876 = vmatpush.bf16.msrb.mxu0 %v1515_v29 }
 0x1fe   :  { %877 = vmatpush.bf16.msrb.mxu0 %v1514_v30 }
 0x200   :  { %626 = vmatmul.bf16.gmra.mxu2 %v525_v36 }
 0x202   :  { %878 = vmatpush.bf16.msrb.mxu0 %v1513_v31 }
 0x206   :  { %879 = vmatpush.bf16.msrb.mxu0 %v1512_v32 }
 0x20a   :  { %880 = vmatpush.bf16.msrb.mxu0 %v1511_v33 }
 0x210   :  { %631 = vmatmul.bf16.gmra.mxu2 %v526_v59 }
 0x220   :  { %636 = vmatmul.bf16.gmra.mxu2 %v527_v1 }
 0x233   :  { %v602_v2 = vpop.f32.mrf.mxu2 }
 0x23b   :  { %v604_v3 = vpop.f32.mrf.mxu2 }
 0x23c   :  { %v642_v4 = vpack.c.bf16 %v604_v3, %v602_v2 }
 0x243   :  { %v607_v5 = vpop.f32.mrf.mxu2 }
 0x24b   :  { %v609_v6 = vpop.f32.mrf.mxu2 }
 0x24c   :  { %v643_v7 = vpack.c.bf16 %v609_v6, %v607_v5 }
 0x253   :  { %v612_v8 = vpop.f32.mrf.mxu2 }
 0x25b   :  { %v614_v9 = vpop.f32.mrf.mxu2 }
 0x25c   :  { %v644_v10 = vpack.c.bf16 %v614_v9, %v612_v8 }
 0x263   :  { %v617_v11 = vpop.f32.mrf.mxu2 }
 0x26b   :  { %v619_v12 = vpop.f32.mrf.mxu2 }
 0x26c   :  { %v645_v13 = vpack.c.bf16 %v619_v12, %v617_v11 }
 0x273   :  { %v622_v14 = vpop.f32.mrf.mxu2 }
 0x27b   :  { %v624_v15 = vpop.f32.mrf.mxu2 }
 0x27c   :  { %v646_v25 = vpack.c.bf16 %v624_v15, %v622_v14 }
 0x283   :  { %v627_v16 = vpop.f32.mrf.mxu2 }
 0x28b   :  { %v629_v17 = vpop.f32.mrf.mxu2 }
 0x28c   :  { %v647_v24 = vpack.c.bf16 %v629_v17, %v627_v16 }
 0x293   :  { %v632_v18 = vpop.f32.mrf.mxu2 }
 0x29b   :  { %v634_v19 = vpop.f32.mrf.mxu2 }
 0x29c   :  { %v648_v23 = vpack.c.bf16 %v634_v19, %v632_v18 }
 0x2a3   :  { %v637_v20 = vpop.f32.mrf.mxu2 }
 0x2ab   :  { %v639_v21 = vpop.f32.mrf.mxu2 }
 0x2ac   :  { %v649_v22 = vpack.c.bf16 %v639_v21, %v637_v20 }
 0x2ae   :  { %655 = vmatpush.bf16.msrb.mxu3 %v649_v22 }
 0x2b2   :  { %656 = vmatpush.bf16.msrb.mxu3 %v648_v23 }
 0x2b6   :  { %657 = vmatpush.bf16.msrb.mxu3 %v647_v24 }
 0x2ba   :  { %658 = vmatpush.bf16.msrb.mxu3 %v646_v25 }
 0x2be   :  { %659 = vmatpush.bf16.msrb.mxu3 %v645_v13 }
 0x2c2   :  { %660 = vmatpush.bf16.msrb.mxu3 %v644_v10 }
 0x2c6   :  { %661 = vmatpush.bf16.msrb.mxu3 %v643_v7 }
 0x2ca   :  { %662 = vmatpush.bf16.msrb.mxu3 %v642_v4 }
 0x2cd   :  { %663 = vmatmul.bf16.vlgmr.msrb.gmra.mxu3 %v1950_v40 }
 0x2dd   :  { %668 = vmatmul.bf16.gmra.mxu3 %v1953_v41 }
 0x2ed   :  { %673 = vmatmul.bf16.gmra.mxu3 %v1959_v43 }
 0x2fd   :  { %678 = vmatmul.bf16.gmra.mxu3 %v1965_v46 }
 0x30d   :  { %683 = vmatmul.bf16.gmra.mxu3 %v1971_v48 }
 0x31d   :  { %688 = vmatmul.bf16.gmra.mxu3 %v1956_v42 }
 0x32d   :  { %693 = vmatmul.bf16.gmra.mxu3 %v1962_v44 }
 0x33d   :  { %698 = vmatmul.bf16.gmra.mxu3 %v1967_v47 }
 0x350   :  { %v664_v35 = vpop.f32.mrf.mxu3 }
 0x351   :  { %v665_v36 = vadd.f32 %v2000_v34, %v664_v35 }
 0x353   :  { %v720_v37 = vmin.f32 %v665_v36, 0.0  ;;  %vm704_vm0 = vcmp.gt.f32.partialorder %v665_v36, 0.0 }
 0x355   :  { %v736_v38 = vmul.f32 1.442695, %v720_v37 }
 0x357   :  { %1593 = vpow2.f32 %v736_v38 }
 0x358   :  { %v666_v39 = vpop.f32.mrf.mxu3 }
 0x359   :  { %v667_v45 = vadd.f32 %v2000_v34, %v666_v39 }
 0x35b   :  { %v721_v49 = vmin.f32 %v667_v45, 0.0  ;;  %vm705_vm1 = vcmp.gt.f32.partialorder %v667_v45, 0.0 }
 0x35d   :  { %v738_v50 = vmul.f32 1.442695, %v721_v49  ;;  %v1594_v52 = vpop.eup %1593 }
 0x35e   :  { %v1383_v55 = vadd.f32 -1.0, %v1594_v52 }
 0x35f   :  { %1595 = vpow2.f32 %v738_v50 }
 0x360   :  { %v669_v51 = vpop.f32.mrf.mxu3  ;;  %v784_v61 = vsel %vm704_vm0, %v665_v36, %v1383_v55 }
 0x361   :  { %v670_v53 = vadd.f32 %v2000_v34, %v669_v51 }
 0x363   :  { %v722_v54 = vmin.f32 %v670_v53, 0.0  ;;  %vm706_vm2 = vcmp.gt.f32.partialorder %v670_v53, 0.0 }
 0x365   :  { %v1596_v57 = vpop.eup %1595  ;;  %v740_v59 = vmul.f32 1.442695, %v722_v54 }
 0x366   :  { %v1384_v58 = vadd.f32 -1.0, %v1596_v57 }
 0x367   :  { %1597 = vpow2.f32 %v740_v59 }
 0x368   :  { %v671_v60 = vpop.f32.mrf.mxu3  ;;  %v785_v62 = vsel %vm705_vm1, %v667_v45, %v1384_v58 }
 0x369   :  { %v672_v56 = vadd.f32 %v2000_v34, %v671_v60  ;;  %v800_v63 = vpack.c.bf16 %v785_v62, %v784_v61 }
 0x36b   :  { %v723_v0 = vmin.f32 %v672_v56, 0.0  ;;  %881 = vmatmul.bf16.vlgmr.msrb.gmra.mxu0 %v800_v63  ;;  %vm707_vm3 = vcmp.gt.f32.partialorder %v672_v56, 0.0 }
 0x36d   :  { %v742_v1 = vmul.f32 1.442695, %v723_v0  ;;  %v1598_v3 = vpop.eup %1597 }
 0x36e   :  { %v1385_v6 = vadd.f32 -1.0, %v1598_v3 }
 0x36f   :  { %1599 = vpow2.f32 %v742_v1 }
 0x370   :  { %v674_v2 = vpop.f32.mrf.mxu3  ;;  %v786_v11 = vsel %vm706_vm2, %v670_v53, %v1385_v6 }
 0x371   :  { %v675_v4 = vadd.f32 %v2000_v34, %v674_v2 }
 0x373   :  { %v724_v5 = vmin.f32 %v675_v4, 0.0  ;;  %vm708_vm4 = vcmp.gt.f32.partialorder %v675_v4, 0.0 }
 0x375   :  { %v1600_v7 = vpop.eup %1599  ;;  %v744_v9 = vmul.f32 1.442695, %v724_v5 }
 0x376   :  { %v1386_v8 = vadd.f32 -1.0, %v1600_v7 }
 0x377   :  { %1601 = vpow2.f32 %v744_v9 }
 0x378   :  { %v676_v10 = vpop.f32.mrf.mxu3  ;;  %v787_v12 = vsel %vm707_vm3, %v672_v56, %v1386_v8 }
 0x379   :  { %v677_v13 = vadd.f32 %v2000_v34, %v676_v10  ;;  %v801_v14 = vpack.c.bf16 %v787_v12, %v786_v11 }
 0x37b   :  { %v725_v15 = vmin.f32 %v677_v13, 0.0  ;;  %886 = vmatmul.bf16.gmra.mxu0 %v801_v14  ;;  %vm709_vm5 = vcmp.gt.f32.partialorder %v677_v13, 0.0 }
 0x37d   :  { %v746_v16 = vmul.f32 1.442695, %v725_v15  ;;  %v1602_v18 = vpop.eup %1601 }
 0x37e   :  { %v1387_v21 = vadd.f32 -1.0, %v1602_v18 }
 0x37f   :  { %1603 = vpow2.f32 %v746_v16 }
 0x380   :  { %v679_v17 = vpop.f32.mrf.mxu3  ;;  %v788_v26 = vsel %vm708_vm4, %v675_v4, %v1387_v21 }
 0x381   :  { %v680_v19 = vadd.f32 %v2000_v34, %v679_v17 }
 0x383   :  { %v726_v20 = vmin.f32 %v680_v19, 0.0  ;;  %vm710_vm6 = vcmp.gt.f32.partialorder %v680_v19, 0.0 }
 0x385   :  { %v1604_v22 = vpop.eup %1603  ;;  %v748_v24 = vmul.f32 1.442695, %v726_v20 }
 0x386   :  { %v1388_v23 = vadd.f32 -1.0, %v1604_v22 }
 0x387   :  { %1605 = vpow2.f32 %v748_v24 }
 0x388   :  { %v681_v25 = vpop.f32.mrf.mxu3  ;;  %v789_v27 = vsel %vm709_vm5, %v677_v13, %v1388_v23 }
 0x389   :  { %v682_v28 = vadd.f32 %v2000_v34, %v681_v25  ;;  %v802_v29 = vpack.c.bf16 %v789_v27, %v788_v26 }
 0x38b   :  { %v727_v30 = vmin.f32 %v682_v28, 0.0  ;;  %891 = vmatmul.bf16.gmra.mxu0 %v802_v29  ;;  %vm711_vm7 = vcmp.gt.f32.partialorder %v682_v28, 0.0 }
 0x38d   :  { %v750_v31 = vmul.f32 1.442695, %v727_v30  ;;  %v1606_v33 = vpop.eup %1605 }
 0x38e   :  { %v1389_v37 = vadd.f32 -1.0, %v1606_v33 }
 0x38f   :  { %1607 = vpow2.f32 %v750_v31 }
 0x390   :  { %v684_v32 = vpop.f32.mrf.mxu3  ;;  %v790_v50 = vsel %vm710_vm6, %v680_v19, %v1389_v37 }
 0x391   :  { %v685_v35 = vadd.f32 %v2000_v34, %v684_v32 }
 0x393   :  { %v728_v36 = vmin.f32 %v685_v35, 0.0  ;;  %vm712_vm8 = vcmp.gt.f32.partialorder %v685_v35, 0.0 }
 0x395   :  { %v1608_v38 = vpop.eup %1607  ;;  %v752_v45 = vmul.f32 1.442695, %v728_v36 }
 0x396   :  { %v1390_v39 = vadd.f32 -1.0, %v1608_v38 }
 0x397   :  { %1609 = vpow2.f32 %v752_v45 }
 0x398   :  { %v686_v49 = vpop.f32.mrf.mxu3  ;;  %v791_v51 = vsel %vm711_vm7, %v682_v28, %v1390_v39 }
 0x399   :  { %v687_v52 = vadd.f32 %v2000_v34, %v686_v49  ;;  %v803_v53 = vpack.c.bf16 %v791_v51, %v790_v50 }
 0x39b   :  { %v729_v54 = vmin.f32 %v687_v52, 0.0  ;;  %896 = vmatmul.bf16.gmra.mxu0 %v803_v53  ;;  %vm713_vm9 = vcmp.gt.f32.partialorder %v687_v52, 0.0 }
 0x39d   :  { %v754_v55 = vmul.f32 1.442695, %v729_v54  ;;  %v1610_v58 = vpop.eup %1609 }
 0x39e   :  { %v1391_v61 = vadd.f32 -1.0, %v1610_v58 }
 0x39f   :  { %1611 = vpow2.f32 %v754_v55 }
 0x3a0   :  { %v689_v57 = vpop.f32.mrf.mxu3  ;;  %v792_v1 = vsel %vm712_vm8, %v685_v35, %v1391_v61 }
 0x3a1   :  { %v690_v59 = vadd.f32 %v2000_v34, %v689_v57 }
 0x3a3   :  { %v730_v60 = vmin.f32 %v690_v59, 0.0  ;;  %vm714_vm10 = vcmp.gt.f32.partialorder %v690_v59, 0.0 }
 0x3a5   :  { %v1612_v62 = vpop.eup %1611  ;;  %v756_v63 = vmul.f32 1.442695, %v730_v60 }
 0x3a6   :  { %v1392_v56 = vadd.f32 -1.0, %v1612_v62 }
 0x3a7   :  { %1613 = vpow2.f32 %v756_v63 }
 0x3a8   :  { %v691_v0 = vpop.f32.mrf.mxu3  ;;  %v793_v2 = vsel %vm713_vm9, %v687_v52, %v1392_v56 }
 0x3a9   :  { %v692_v3 = vadd.f32 %v2000_v34, %v691_v0  ;;  %v804_v4 = vpack.c.bf16 %v793_v2, %v792_v1 }
 0x3ab   :  { %v731_v5 = vmin.f32 %v692_v3, 0.0  ;;  %901 = vmatmul.bf16.gmra.mxu0 %v804_v4  ;;  %vm715_vm11 = vcmp.gt.f32.partialorder %v692_v3, 0.0 }
 0x3ad   :  { %v758_v6 = vmul.f32 1.442695, %v731_v5  ;;  %v1614_v8 = vpop.eup %1613 }
 0x3ae   :  { %v1393_v11 = vadd.f32 -1.0, %v1614_v8 }
 0x3af   :  { %1615 = vpow2.f32 %v758_v6 }
 0x3b0   :  { %v694_v7 = vpop.f32.mrf.mxu3  ;;  %v794_v16 = vsel %vm714_vm10, %v690_v59, %v1393_v11 }
 0x3b1   :  { %v695_v9 = vadd.f32 %v2000_v34, %v694_v7 }
 0x3b3   :  { %v732_v10 = vmin.f32 %v695_v9, 0.0  ;;  %vm716_vm12 = vcmp.gt.f32.partialorder %v695_v9, 0.0 }
 0x3b5   :  { %v1616_v12 = vpop.eup %1615  ;;  %v760_v14 = vmul.f32 1.442695, %v732_v10 }
 0x3b6   :  { %v1394_v13 = vadd.f32 -1.0, %v1616_v12  ;;  %v2026_v12 = vld [vmem:[#allocation8 + $0x2] ss:$0 sm:$0xff] }
 0x3b7   :  { %1617 = vpow2.f32 %v760_v14 }
 0x3b8   :  { %v696_v15 = vpop.f32.mrf.mxu3  ;;  %v795_v17 = vsel %vm715_vm11, %v692_v3, %v1394_v13 }
 0x3b9   :  { %v697_v18 = vadd.f32 %v2000_v34, %v696_v15  ;;  %v805_v19 = vpack.c.bf16 %v795_v17, %v794_v16 }
 0x3bb   :  { %v733_v20 = vmin.f32 %v697_v18, 0.0  ;;  %906 = vmatmul.bf16.gmra.mxu0 %v805_v19  ;;  %vm717_vm13 = vcmp.gt.f32.partialorder %v697_v18, 0.0 }
 0x3bd   :  { %v762_v21 = vmul.f32 1.442695, %v733_v20  ;;  %v1618_v23 = vpop.eup %1617 }
 0x3be   :  { %v1395_v26 = vadd.f32 -1.0, %v1618_v23 }
 0x3bf   :  { %1619 = vpow2.f32 %v762_v21 }
 0x3c0   :  { %v699_v22 = vpop.f32.mrf.mxu3  ;;  %v796_v31 = vsel %vm716_vm12, %v695_v9, %v1395_v26 }
 0x3c1   :  { %v700_v24 = vadd.f32 %v2000_v34, %v699_v22 }
 0x3c3   :  { %v734_v25 = vmin.f32 %v700_v24, 0.0  ;;  %vm718_vm14 = vcmp.gt.f32.partialorder %v700_v24, 0.0 }
 0x3c5   :  { %v1620_v27 = vpop.eup %1619  ;;  %v764_v29 = vmul.f32 1.442695, %v734_v25 }
 0x3c6   :  { %v1396_v28 = vadd.f32 -1.0, %v1620_v27 }
 0x3c7   :  { %1621 = vpow2.f32 %v764_v29 }
 0x3c8   :  { %v701_v30 = vpop.f32.mrf.mxu3  ;;  %v797_v32 = vsel %vm717_vm13, %v697_v18, %v1396_v28 }
 0x3c9   :  { %v702_v33 = vadd.f32 %v2000_v34, %v701_v30  ;;  %v806_v35 = vpack.c.bf16 %v797_v32, %v796_v31 }
 0x3cb   :  { %v735_v36 = vmin.f32 %v702_v33, 0.0  ;;  %911 = vmatmul.bf16.gmra.mxu0 %v806_v35  ;;  %vm719_vm15 = vcmp.gt.f32.partialorder %v702_v33, 0.0 }
 0x3cd   :  { %v766_v37 = vmul.f32 1.442695, %v735_v36  ;;  %v1622_v38 = vpop.eup %1621 }
 0x3ce   :  { %v1397_v39 = vadd.f32 -1.0, %v1622_v38 }
 0x3cf   :  { %1623 = vpow2.f32 %v766_v37 }
 0x3d0   :  { %v798_v50 = vsel %vm718_vm14, %v700_v24, %v1397_v39 }
 0x3d5   :  { %v1624_v45 = vpop.eup %1623 }
 0x3d6   :  { %v1398_v49 = vadd.f32 -1.0, %v1624_v45 }
 0x3d8   :  { %v799_v51 = vsel %vm719_vm15, %v702_v33, %v1398_v49 }
 0x3d9   :  { %v807_v52 = vpack.c.bf16 %v799_v51, %v798_v50 }
 0x3db   :  { %916 = vmatmul.bf16.gmra.mxu0 %v807_v52 }
 0x3e8   :  { %v882_v53 = vpop.f32.mrf.mxu0 }
 0x3f0   :  { %v884_v54 = vpop.f32.mrf.mxu0 }
 0x3f1   :  { %v922_v55 = vpack.c.bf16 %v884_v54, %v882_v53 }
 0x3f8   :  { %v887_v34 = vpop.f32.mrf.mxu0 }
 0x400   :  { %v889_v57 = vpop.f32.mrf.mxu0 }
 0x401   :  { %v923_v58 = vpack.c.bf16 %v889_v57, %v887_v34 }
 0x408   :  { %v892_v59 = vpop.f32.mrf.mxu0 }
 0x410   :  { %v894_v60 = vpop.f32.mrf.mxu0 }
 0x411   :  { %v924_v61 = vpack.c.bf16 %v894_v60, %v892_v59 }
 0x418   :  { %v897_v62 = vpop.f32.mrf.mxu0 }
 0x420   :  { %v899_v56 = vpop.f32.mrf.mxu0 }
 0x421   :  { %v925_v63 = vpack.c.bf16 %v899_v56, %v897_v62 }
 0x428   :  { %v902_v0 = vpop.f32.mrf.mxu0 }
 0x430   :  { %v904_v1 = vpop.f32.mrf.mxu0 }
 0x431   :  { %v926_v11 = vpack.c.bf16 %v904_v1, %v902_v0 }
 0x438   :  { %v907_v2 = vpop.f32.mrf.mxu0 }
 0x440   :  { %v909_v3 = vpop.f32.mrf.mxu0 }
 0x441   :  { %v927_v10 = vpack.c.bf16 %v909_v3, %v907_v2 }
 0x448   :  { %v912_v4 = vpop.f32.mrf.mxu0 }
 0x450   :  { %v914_v5 = vpop.f32.mrf.mxu0 }
 0x451   :  { %v928_v9 = vpack.c.bf16 %v914_v5, %v912_v4 }
 0x458   :  { %v917_v6 = vpop.f32.mrf.mxu0 }
 0x460   :  { %v919_v7 = vpop.f32.mrf.mxu0 }
 0x461   :  { %v929_v8 = vpack.c.bf16 %v919_v7, %v917_v6 }
 0x463   :  { %935 = vmatpush.bf16.msrb.mxu1 %v929_v8 }
 0x467   :  { %936 = vmatpush.bf16.msrb.mxu1 %v928_v9 }
 0x46b   :  { %937 = vmatpush.bf16.msrb.mxu1 %v927_v10 }
 0x46f   :  { %938 = vmatpush.bf16.msrb.mxu1 %v926_v11 }
 0x473   :  { %939 = vmatpush.bf16.msrb.mxu1 %v925_v63 }
 0x477   :  { %940 = vmatpush.bf16.msrb.mxu1 %v924_v61 }
 0x47b   :  { %941 = vmatpush.bf16.msrb.mxu1 %v923_v58 }
 0x47f   :  { %942 = vmatpush.bf16.msrb.mxu1 %v922_v55 }
 0x482   :  { %943 = vmatmul.bf16.vlgmr.msrb.gmra.mxu1 %v1950_v40 }
 0x492   :  { %948 = vmatmul.bf16.gmra.mxu1 %v1953_v41 }
 0x4a2   :  { %953 = vmatmul.bf16.gmra.mxu1 %v1959_v43 }
 0x4b2   :  { %958 = vmatmul.bf16.gmra.mxu1 %v1965_v46 }
 0x4c2   :  { %963 = vmatmul.bf16.gmra.mxu1 %v1971_v48 }
 0x4d2   :  { %968 = vmatmul.bf16.gmra.mxu1 %v1956_v42 }
 0x4e2   :  { %973 = vmatmul.bf16.gmra.mxu1 %v1962_v44 }
 0x4f2   :  { %978 = vmatmul.bf16.gmra.mxu1 %v1967_v47 }
 0x4ff   :  { %v944_v13 = vpop.f32.mrf.mxu1 }
 0x500   :  { %v945_v14 = vadd.f32 %v2026_v12, %v944_v13 }
 0x502   :  { %v1000_v40 = vmin.f32 %v945_v14, 0.0  ;;  %vm984_vm0 = vcmp.gt.f32.partialorder %v945_v14, 0.0 }
 0x504   :  { %v1016_v15 = vmul.f32 1.442695, %v1000_v40 }
 0x506   :  { %1625 = vpow2.f32 %v1016_v15 }
 0x507   :  { %v946_v41 = vpop.f32.mrf.mxu1 }
 0x508   :  { %v947_v43 = vadd.f32 %v2026_v12, %v946_v41 }
 0x50a   :  { %v1001_v46 = vmin.f32 %v947_v43, 0.0  ;;  %vm985_vm1 = vcmp.gt.f32.partialorder %v947_v43, 0.0 }
 0x50c   :  { %v1626_v16 = vpop.eup %1625  ;;  %v1018_v48 = vmul.f32 1.442695, %v1001_v46 }
 0x50d   :  { %v1431_v17 = vadd.f32 -1.0, %v1626_v16 }
 0x50e   :  { %1627 = vpow2.f32 %v1018_v48 }
 0x50f   :  { %v949_v42 = vpop.f32.mrf.mxu1  ;;  %v2030_v44 = vsel %vm984_vm0, %v945_v14, %v1431_v17 }
 0x510   :  { %v950_v47 = vadd.f32 %v2026_v12, %v949_v42  ;;  %1088 = vst [vmem:[#allocation14] sm:$0xff] %v2030_v44 }
 0x512   :  { %v1002_v18 = vmin.f32 %v950_v47, 0.0  ;;  %vm986_vm2 = vcmp.gt.f32.partialorder %v950_v47, 0.0 }
 0x514   :  { %v1628_v19 = vpop.eup %1627  ;;  %v1020_v20 = vmul.f32 1.442695, %v1002_v18 }
 0x515   :  { %v1432_v21 = vadd.f32 -1.0, %v1628_v19 }
 0x516   :  { %1629 = vpow2.f32 %v1020_v20 }
 0x517   :  { %v951_v22 = vpop.f32.mrf.mxu1  ;;  %v2034_v23 = vsel %vm985_vm1, %v947_v43, %v1432_v21 }
 0x518   :  { %v952_v24 = vadd.f32 %v2026_v12, %v951_v22  ;;  %v1080_v25 = vpack.c.bf16 %v2034_v23, %v2030_v44  ;;  %1089 = vst [vmem:[#allocation14 + $0x8] sm:$0xff] %v2034_v23  ;;  %v1560_v44 = vld [vmem:[%s2111_s6] ss:$0 sm:$0xff] }
 0x51a   :  { %v1003_v26 = vmin.f32 %v952_v24, 0.0  ;;  %vm987_vm3 = vcmp.gt.f32.partialorder %v952_v24, 0.0 }
 0x51c   :  { %v1630_v27 = vpop.eup %1629  ;;  %v1022_v28 = vmul.f32 1.442695, %v1003_v26 }
 0x51d   :  { %v1433_v29 = vadd.f32 -1.0, %v1630_v27 }
 0x51e   :  { %1631 = vpow2.f32 %v1022_v28 }
 0x51f   :  { %v954_v30 = vpop.f32.mrf.mxu1  ;;  %v2040_v31 = vsel %vm986_vm2, %v950_v47, %v1433_v29 }
 0x520   :  { %v955_v32 = vadd.f32 %v2026_v12, %v954_v30  ;;  %1090 = vst [vmem:[#allocation14 + $0x10] sm:$0xff] %v2040_v31 }
 0x522   :  { %v1004_v33 = vmin.f32 %v955_v32, 0.0  ;;  %vm988_vm4 = vcmp.gt.f32.partialorder %v955_v32, 0.0 }
 0x524   :  { %v1632_v35 = vpop.eup %1631  ;;  %v1024_v36 = vmul.f32 1.442695, %v1004_v33 }
 0x525   :  { %v1434_v37 = vadd.f32 -1.0, %v1632_v35 }
 0x526   :  { %1633 = vpow2.f32 %v1024_v36 }
 0x527   :  { %v956_v38 = vpop.f32.mrf.mxu1  ;;  %v2044_v39 = vsel %vm987_vm3, %v952_v24, %v1434_v37 }
 0x528   :  { %v957_v45 = vadd.f32 %v2026_v12, %v956_v38  ;;  %v1081_v49 = vpack.c.bf16 %v2044_v39, %v2040_v31  ;;  %1091 = vst [vmem:[#allocation14 + $0x18] sm:$0xff] %v2044_v39 }
 0x52a   :  { %v1005_v50 = vmin.f32 %v957_v45, 0.0  ;;  %vm989_vm5 = vcmp.gt.f32.partialorder %v957_v45, 0.0 }
 0x52c   :  { %v1634_v51 = vpop.eup %1633  ;;  %v1026_v52 = vmul.f32 1.442695, %v1005_v50 }
 0x52d   :  { %v1435_v53 = vadd.f32 -1.0, %v1634_v51 }
 0x52e   :  { %1635 = vpow2.f32 %v1026_v52 }
 0x52f   :  { %v959_v54 = vpop.f32.mrf.mxu1  ;;  %v2050_v55 = vsel %vm988_vm4, %v955_v32, %v1435_v53 }
 0x530   :  { %v960_v34 = vadd.f32 %v2026_v12, %v959_v54  ;;  %1092 = vst [vmem:[#allocation14 + $0x20] sm:$0xff] %v2050_v55 }
 0x532   :  { %v1006_v57 = vmin.f32 %v960_v34, 0.0  ;;  %vm990_vm6 = vcmp.gt.f32.partialorder %v960_v34, 0.0 }
 0x534   :  { %v1636_v58 = vpop.eup %1635  ;;  %v1028_v59 = vmul.f32 1.442695, %v1006_v57 }
 0x535   :  { %v1436_v60 = vadd.f32 -1.0, %v1636_v58 }
 0x536   :  { %1637 = vpow2.f32 %v1028_v59 }
 0x537   :  { %v961_v61 = vpop.f32.mrf.mxu1  ;;  %v2054_v62 = vsel %vm989_vm5, %v957_v45, %v1436_v60 }
 0x538   :  { %v962_v56 = vadd.f32 %v2026_v12, %v961_v61  ;;  %v1082_v63 = vpack.c.bf16 %v2054_v62, %v2050_v55  ;;  %1093 = vst [vmem:[#allocation14 + $0x28] sm:$0xff] %v2054_v62 }
 0x53a   :  { %v1007_v0 = vmin.f32 %v962_v56, 0.0  ;;  %vm991_vm7 = vcmp.gt.f32.partialorder %v962_v56, 0.0 }
 0x53c   :  { %v1638_v1 = vpop.eup %1637  ;;  %v1030_v2 = vmul.f32 1.442695, %v1007_v0 }
 0x53d   :  { %v1437_v3 = vadd.f32 -1.0, %v1638_v1 }
 0x53e   :  { %1639 = vpow2.f32 %v1030_v2 }
 0x53f   :  { %v964_v4 = vpop.f32.mrf.mxu1  ;;  %v2060_v5 = vsel %vm990_vm6, %v960_v34, %v1437_v3 }
 0x540   :  { %v965_v6 = vadd.f32 %v2026_v12, %v964_v4  ;;  %1094 = vst [vmem:[#allocation14 + $0x30] sm:$0xff] %v2060_v5 }
 0x542   :  { %v1008_v7 = vmin.f32 %v965_v6, 0.0  ;;  %vm992_vm8 = vcmp.gt.f32.partialorder %v965_v6, 0.0 }
 0x544   :  { %v1640_v8 = vpop.eup %1639  ;;  %v1032_v9 = vmul.f32 1.442695, %v1008_v7 }
 0x545   :  { %v1438_v10 = vadd.f32 -1.0, %v1640_v8 }
 0x546   :  { %1641 = vpow2.f32 %v1032_v9 }
 0x547   :  { %v966_v11 = vpop.f32.mrf.mxu1  ;;  %v2064_v13 = vsel %vm991_vm7, %v962_v56, %v1438_v10 }
 0x548   :  { %v967_v14 = vadd.f32 %v2026_v12, %v966_v11  ;;  %v1083_v40 = vpack.c.bf16 %v2064_v13, %v2060_v5  ;;  %1095 = vst [vmem:[#allocation14 + $0x38] sm:$0xff] %v2064_v13  ;;  %v1104_v5 = vld [vmem:[#allocation10] sm:$0xf] }
 0x54a   :  { %v1009_v15 = vmin.f32 %v967_v14, 0.0  ;;  %vm993_vm9 = vcmp.gt.f32.partialorder %v967_v14, 0.0 }
 0x54c   :  { %v1642_v41 = vpop.eup %1641  ;;  %v1034_v43 = vmul.f32 1.442695, %v1009_v15  ;;  %v1526_v15 = vld [vmem:[#allocation11 + $0x38] sm:$0xff] }
 0x54d   :  { %v1439_v46 = vadd.f32 -1.0, %v1642_v41  ;;  %1187 = vmatpush.bf16.msra.mxu3 %v1526_v15  ;;  %v1525_v41 = vld [vmem:[#allocation11 + $0x30] sm:$0xff] }
 0x54e   :  { %1643 = vpow2.f32 %v1034_v43  ;;  %v1524_v43 = vld [vmem:[#allocation11 + $0x28] sm:$0xff] }
 0x54f   :  { %v969_v16 = vpop.f32.mrf.mxu1  ;;  %v2070_v48 = vsel %vm992_vm8, %v965_v6, %v1439_v46 }
 0x550   :  { %v970_v17 = vadd.f32 %v2026_v12, %v969_v16  ;;  %1096 = vst [vmem:[#allocation14 + $0x40] sm:$0xff] %v2070_v48  ;;  %v1523_v16 = vld [vmem:[#allocation11 + $0x20] sm:$0xff] }
 0x551   :  { %1188 = vmatpush.bf16.msra.mxu3 %v1525_v41 }
 0x552   :  { %v1010_v42 = vmin.f32 %v970_v17, 0.0  ;;  %vm994_vm10 = vcmp.gt.f32.partialorder %v970_v17, 0.0 }
 0x554   :  { %v1644_v47 = vpop.eup %1643  ;;  %v1036_v18 = vmul.f32 1.442695, %v1010_v42  ;;  %v1522_v42 = vld [vmem:[#allocation11 + $0x18] sm:$0xff] }
 0x555   :  { %v1440_v19 = vadd.f32 -1.0, %v1644_v47  ;;  %1189 = vmatpush.bf16.msra.mxu3 %v1524_v43  ;;  %v1521_v47 = vld [vmem:[#allocation11 + $0x10] sm:$0xff] }
 0x556   :  { %1645 = vpow2.f32 %v1036_v18  ;;  %v1520_v18 = vld [vmem:[#allocation11 + $0x8] sm:$0xff] }
 0x557   :  { %v971_v20 = vpop.f32.mrf.mxu1  ;;  %v2074_v21 = vsel %vm993_vm9, %v967_v14, %v1440_v19 }
 0x558   :  { %v972_v22 = vadd.f32 %v2026_v12, %v971_v20  ;;  %1097 = vst [vmem:[#allocation14 + $0x48] sm:$0xff] %v2074_v21 }
 0x559   :  { %1190 = vmatpush.bf16.msra.mxu3 %v1523_v16 }
 0x55a   :  { %v1011_v24 = vmin.f32 %v972_v22, 0.0  ;;  %vm995_vm11 = vcmp.gt.f32.partialorder %v972_v22, 0.0 }
 0x55c   :  { %v1646_v26 = vpop.eup %1645  ;;  %v1038_v27 = vmul.f32 1.442695, %v1011_v24 }
 0x55d   :  { %v1441_v28 = vadd.f32 -1.0, %v1646_v26  ;;  %1191 = vmatpush.bf16.msra.mxu3 %v1522_v42 }
 0x55e   :  { %1647 = vpow2.f32 %v1038_v27 }
 0x55f   :  { %v974_v29 = vpop.f32.mrf.mxu1  ;;  %v1074_v30 = vsel %vm994_vm10, %v970_v17, %v1441_v28  ;;  %v1084_v17 = vpack.c.bf16 %v2074_v21, %v2070_v48  ;;  %v1519_v48 = vld [vmem:[#allocation11] sm:$0xff] }
 0x560   :  { %v975_v32 = vadd.f32 %v2026_v12, %v974_v29  ;;  %1098 = vst [vmem:[#allocation14 + $0x50] sm:$0xff] %v1074_v30 }
 0x561   :  { %1192 = vmatpush.bf16.msra.mxu3 %v1521_v47 }
 0x562   :  { %v1012_v33 = vmin.f32 %v975_v32, 0.0  ;;  %vm996_vm12 = vcmp.gt.f32.partialorder %v975_v32, 0.0 }
 0x564   :  { %v1648_v35 = vpop.eup %1647  ;;  %v1040_v36 = vmul.f32 1.442695, %v1012_v33 }
 0x565   :  { %v1442_v37 = vadd.f32 -1.0, %v1648_v35  ;;  %1193 = vmatpush.bf16.msra.mxu3 %v1520_v18 }
 0x566   :  { %1649 = vpow2.f32 %v1040_v36 }
 0x567   :  { %v976_v38 = vpop.f32.mrf.mxu1  ;;  %v1075_v45 = vsel %vm995_vm11, %v972_v22, %v1442_v37 }
 0x568   :  { %v977_v50 = vadd.f32 %v2026_v12, %v976_v38  ;;  %1099 = vst [vmem:[#allocation14 + $0x58] sm:$0xff] %v1075_v45  ;;  %v1085_v46 = vpack.c.bf16 %v1075_v45, %v1074_v30 }
 0x569   :  { %1194 = vmatpush.bf16.msra.mxu3 %v1519_v48 }
 0x56a   :  { %v1013_v51 = vmin.f32 %v977_v50, 0.0  ;;  %vm997_vm13 = vcmp.gt.f32.partialorder %v977_v50, 0.0 }
 0x56c   :  { %v1650_v52 = vpop.eup %1649  ;;  %v1042_v53 = vmul.f32 1.442695, %v1013_v51 }
 0x56d   :  { %v1443_v54 = vadd.f32 -1.0, %v1650_v52 }
 0x56e   :  { %1651 = vpow2.f32 %v1042_v53 }
 0x56f   :  { %v979_v34 = vpop.f32.mrf.mxu1  ;;  %v1076_v57 = vsel %vm996_vm12, %v975_v32, %v1443_v54 }
 0x570   :  { %v980_v58 = vadd.f32 %v2026_v12, %v979_v34  ;;  %1100 = vst [vmem:[#allocation14 + $0x60] sm:$0xff] %v1076_v57 }
 0x572   :  { %v1014_v59 = vmin.f32 %v980_v58, 0.0  ;;  %vm998_vm14 = vcmp.gt.f32.partialorder %v980_v58, 0.0 }
 0x574   :  { %v1652_v60 = vpop.eup %1651  ;;  %v1044_v61 = vmul.f32 1.442695, %v1014_v59 }
 0x575   :  { %v1444_v56 = vadd.f32 -1.0, %v1652_v60 }
 0x576   :  { %1653 = vpow2.f32 %v1044_v61 }
 0x577   :  { %v981_v0 = vpop.f32.mrf.mxu1  ;;  %v1077_v1 = vsel %vm997_vm13, %v977_v50, %v1444_v56 }
 0x578   :  { %v982_v2 = vadd.f32 %v2026_v12, %v981_v0  ;;  %1101 = vst [vmem:[#allocation14 + $0x68] sm:$0xff] %v1077_v1  ;;  %v1086_v12 = vpack.c.bf16 %v1077_v1, %v1076_v57 }
 0x57a   :  { %v1015_v3 = vmin.f32 %v982_v2, 0.0  ;;  %vm999_vm15 = vcmp.gt.f32.partialorder %v982_v2, 0.0 }
 0x57c   :  { %v1654_v4 = vpop.eup %1653  ;;  %v1046_v6 = vmul.f32 1.442695, %v1015_v3 }
 0x57d   :  { %v1445_v7 = vadd.f32 -1.0, %v1654_v4 }
 0x57e   :  { %1655 = vpow2.f32 %v1046_v6 }
 0x57f   :  { %v1078_v8 = vsel %vm998_vm14, %v980_v58, %v1445_v7 }
 0x580   :  { %1102 = vst [vmem:[#allocation14 + $0x70] sm:$0xff] %v1078_v8 }
 0x584   :  { %v1656_v9 = vpop.eup %1655 }
 0x585   :  { %v1446_v10 = vadd.f32 -1.0, %v1656_v9 }
 0x587   :  { %v1079_v11 = vsel %vm999_vm15, %v982_v2, %v1446_v10 }
 0x588   :  { %v1087_v14 = vpack.c.bf16 %v1079_v11, %v1078_v8  ;;  %1103 = vst [vmem:[#allocation14 + $0x78] sm:$0xff] %v1079_v11 }
 0x589   :  { %1224 = dma.vmem_to_hbm [thread:$0]  %s1217_s5, 2048, %s1219_s15, [#allocation15], %s1872_s16, %s1872_s16, %s1873_s17  }
 0x58a   :  { %1105 = vmatpush.bf16.msra.mxu2 %v1087_v14 }
 0x58e   :  { %1106 = vmatpush.bf16.msra.mxu2 %v1086_v12 }
 0x592   :  { %1107 = vmatpush.bf16.msra.mxu2 %v1085_v46 }
 0x596   :  { %1108 = vmatpush.bf16.msra.mxu2 %v1084_v17 }
 0x59a   :  { %1109 = vmatpush.bf16.msra.mxu2 %v1083_v40 }
 0x59e   :  { %1110 = vmatpush.bf16.msra.mxu2 %v1082_v63 }
 0x5a2   :  { %1111 = vmatpush.bf16.msra.mxu2 %v1081_v49 }
 0x5a6   :  { %1112 = vmatpush.bf16.msra.mxu2 %v1080_v25 }
 0x5a9   :  { %1113 = vmatmul.bf16.vlgmr.msra.gmra.mxu2 %v1104_v5 }
 0x62c   :  { %v1114_v13 = vpop.f32.mrf.mxu2 }
 0x62d   :  { %v1118_v40 = vpack.c.bf16 %v1114_v13, %v1114_v13 }
 0x62f   :  { %1195 = vmatmul.bf16.vlgmr.msra.gmra.mxu3 %v1118_v40 }
 0x634   :  { %v1116_v55 = vpop.f32.mrf.mxu2 }
 0x6b2   :  { %v1196_v23 = vpop.f32.mrf.mxu3 }
 0x6b3   :  { %v1197_v25 = vadd.f32 %v1560_v44, %v1196_v23 }
 0x6b5   :  { %1200 = vst [vmem:[#allocation13] sm:$0xff] %v1197_v25 }
 0x6b6   :  { %1211 = dma.vmem_to_hbm [thread:$0]  %s1207_s20, 128, %s1209_s22, [#allocation4]  }
 0x6ba   :  { %v1198_v31 = vpop.f32.mrf.mxu3 }
 0x6bb   :  { %1857 = dma.done.wait [#allocation4], 128  }
 0x6bc   :  { %1858 = vsyncadd [#allocation4], 4294967168 }
 0x6bd   :  { %1859 = dma.done.wait [#allocation15], 2048  }
 0x6be   :  { %1860 = vsyncadd [#allocation15], 4294965248 }
 0x6bf   :  { %1233 = vsyncpa [#allocation3], 1 }
 0x6c0   :  { %1234 = vsyncpa [#allocation6], 1 }
 0x6c1   :  { %1235 = vsyncpa [#allocation9], 1 }
 0x6c2   :  { %1236 = vsyncpa [#allocation12], 1 }
 0x6c3   :  { %1237 = vsyncpa [#allocation4], 1 }
 0x6c4   :  { %1238 = vsyncpa [#allocation15], 1 }

</bundles_post_ra>
